<compile_context>
chip_gen: v5e
topology: v5e:2x2
jax: 0.10.0
libtpu: 0.0.40
codegen_flags: <defaults>
</compile_context>

<pallas_src>
import functools

import jax
import jax.numpy as jnp
from jax import lax
from jax.experimental import pallas as pl
from jax.experimental.pallas import tpu as pltpu

_MIB = 1024 * 1024


def _round_up(x, m):
    return ((x + m - 1) // m) * m


def _tpu_generation():
    """Best-effort chip-generation detection (7 for v7x, 6 for v6e, 5 for v5e)."""
    try:
        kind = jax.devices()[0].device_kind.lower()
    except Exception:
        return 6
    if "v7" in kind or "7x" in kind:
        return 7
    if "v6" in kind:
        return 6
    if "v5" in kind:
        return 5
    return 6


def _vmem_capacity_bytes(gen):
    try:
        return int(pltpu.get_tpu_info().vmem_capacity_bytes)
    except Exception:
        # v7x: 64 MiB per TensorCore; v5e/v6e: 128 MiB.
        return (64 if gen >= 7 else 128) * _MIB


def _vmem_need(nb, c, tile, logit_bytes, label_bytes):
    """Conservative per-step VMEM estimate: double-buffered inputs + f32
    temporaries (x upcast, exp(x-m), masked select) + lane accumulators."""
    block_in = nb * c * tile * logit_bytes + nb * tile * label_bytes
    temps = 4 * nb * c * tile * 4
    small = 8 * nb * tile * 4 + 2 * tile * 4
    return 2 * block_in + temps + small


def _pick_block(n, c, hw, logit_bytes, label_bytes, target_bytes, vmem_budget):
    """Pick (batch_block, lane_tile) so each grid step moves ~target_bytes of
    logits (amortizes the ~0.35us per-step overhead) without exceeding the
    VMEM budget."""
    hw_pad = _round_up(hw, 128)
    per_lane = max(1, c * logit_bytes)
    want = max(128, _round_up(target_bytes // per_lane, 128))
    tile = min(min(want, 32768), hw_pad)
    tile = max(128, _round_up(tile, 128))
    while tile > 128 and _vmem_need(1, c, tile, logit_bytes, label_bytes) > vmem_budget:
        tile = max(128, _round_up(tile // 2, 128))

    nb = 1
    if tile >= hw_pad:
        # A whole (padded) image row fits in one tile: block several images per
        # grid step so small-H*W configs keep a roofline-sized per-step DMA.
        for cand in range(2, n + 1):
            if n % cand:
                continue
            blk = cand * c * tile * logit_bytes
            if blk > 2 * target_bytes:
                break
            if _vmem_need(cand, c, tile, logit_bytes, label_bytes) > vmem_budget:
                break
            nb = cand
            if blk >= target_bytes:
                break
    return nb, tile


def _dice_kernel(scal_ref, logits_ref, labels_ref, out_ref, acc_i, acc_c, *,
                 hw, ignore_index, tiles_per_split):
    s = pl.program_id(0)   # split (parallel axis -> v7x megacore)
    bn = pl.program_id(1)  # batch block
    t = pl.program_id(2)   # lane tile within this split

    # NOTE: this reset relies on `s` being the OUTERMOST grid axis (and, when
    # s is sharded across v7x TensorCores, on scratch/out blocks being private
    # per core).  Do not reorder the grid without revisiting this.
    @pl.when(jnp.logical_and(bn == 0, t == 0))
    def _():
        acc_i[...] = jnp.zeros_like(acc_i)
        acc_c[...] = jnp.zeros_like(acc_c)

    x = logits_ref[...].astype(jnp.float32)        # (Nb, C, T), f32 compute
    labels = labels_ref[...].astype(jnp.int32)     # (Nb, 1, T)
    nb, c, tt = x.shape

    # In-kernel ignore_index replacement (host ships only two scalars).
    tmin = scal_ref[0]
    do_rep = scal_ref[1]
    labels = jnp.where(
        jnp.logical_and(do_rep != 0, labels == ignore_index), tmin, labels)

    # Lane validity: masks the partial edge tile and clamped split-padding tiles.
    g = s * tiles_per_split + t                    # UNclamped tile index
    lane = lax.broadcasted_iota(jnp.int32, (1, 1, tt), 2)
    valid = (g * tt + lane) < hw                   # (1, 1, T)

    # Softmax over classes, but only the selected-class probability is needed:
    #   p_sel = exp(x_sel - m) / sum_c exp(x_c - m)
    m = jnp.max(x, axis=1, keepdims=True)                       # (Nb,1,T)
    e = jnp.exp(x - m)                                          # (Nb,C,T)
    sum_e = jnp.sum(e, axis=1, keepdims=True)                   # (Nb,1,T)
    class_ids = lax.broadcasted_iota(jnp.int32, (nb, c, tt), 1)
    sel = jnp.sum(jnp.where(class_ids == labels, e, 0.0),
                  axis=1, keepdims=True)                        # (Nb,1,T)
    inv = pl.reciprocal(sum_e, approx=True)        # EUP slot
    inv = inv * (2.0 - sum_e * inv)                # one Newton step -> ~f32 exact
    inter = jnp.where(valid, sel * inv, 0.0)       # (Nb,1,T)

    # sum(one_hot) == count of pixels whose (rewritten) label is a valid class.
    in_range = jnp.logical_and(labels >= 0, labels < c)
    cnt = jnp.where(jnp.logical_and(valid, in_range), 1.0, 0.0)

    # Lane-wise accumulation; scalar collapse deferred to the last grid step.
    acc_i[...] += jnp.sum(inter, axis=0)           # (1, T)
    acc_c[...] += jnp.sum(cnt, axis=0)             # (1, T)

    @pl.when(jnp.logical_and(bn == pl.num_programs(1) - 1,
                             t == pl.num_programs(2) - 1))
    def _():
        out_ref[0, 0] = jnp.sum(acc_i[...])        # intersection partial
        out_ref[0, 1] = jnp.sum(acc_c[...])        # one-hot-count partial


def dice_loss(output, target, smooth=1.0, ignore_index=255, tile=None,
              num_splits=None):
    """output: (N, C, H, W) logits (any float dtype); target: (N, H, W) int labels."""
    N, C, H, W = output.shape
    HW = H * W

    gen = _tpu_generation()
    vmem_cap = _vmem_capacity_bytes(gen)
    vmem_limit = max(32 * _MIB, min(int(vmem_cap * 0.75), vmem_cap - 8 * _MIB))
    vmem_budget = int(vmem_limit * 0.8)
    target_bytes = (4 if gen >= 7 else 2) * _MIB
    if num_splits is None:
        num_splits = 2 if gen >= 7 else 1          # only v7x has 2 TensorCores

    logit_bytes = jnp.dtype(output.dtype).itemsize
    label_bytes = jnp.dtype(target.dtype).itemsize

    # Replicate: if ignore_index not in range(target.min(), target.max()):
    #                if (target == ignore_index).sum() > 0:
    #                    target[target == ignore_index] = target.min()
    # Only two scalars leave this host-side reduction; the label rewrite itself
    # happens inside the kernel (no extra HBM write+read of the label array).
    tmin = jnp.min(target)
    tmax = jnp.max(target)
    in_py_range = jnp.logical_and(ignore_index >= tmin, ignore_index < tmax)
    has_ignore = jnp.any(target == ignore_index)
    do_replace = jnp.logical_and(jnp.logical_not(in_py_range), has_ignore)
    scal = jnp.stack([tmin.astype(jnp.int32), do_replace.astype(jnp.int32)])

    # Free, contiguous reshapes — no transpose, no dtype widen on the host.
    logits = output.reshape(N, C, HW)
    labels = target.reshape(N, 1, HW)

    if tile is None:
        Nb, tile = _pick_block(N, C, HW, logit_bytes, label_bytes,
                               target_bytes, vmem_budget)
    else:
        tile = max(128, _round_up(int(tile), 128))
        Nb = 1
    num_tiles = pl.cdiv(HW, tile)
    num_batch_blocks = N // Nb
    S = max(1, min(int(num_splits), num_tiles))
    tiles_per_split = pl.cdiv(num_tiles, S)

    def data_map(s, bn, t, scal_ref):
        # Clamp split-padding tiles onto a real block; the in-kernel lane mask
        # (built from the UNclamped index) zeroes their contribution.
        g = jnp.minimum(s * tiles_per_split + t, num_tiles - 1)
        return (bn, 0, g)

    kernel = functools.partial(_dice_kernel, hw=HW, ignore_index=ignore_index,
                               tiles_per_split=tiles_per_split)

    partials = pl.pallas_call(
        kernel,
        out_shape=jax.ShapeDtypeStruct((S, 2), jnp.float32),
        grid_spec=pltpu.PrefetchScalarGridSpec(
            num_scalar_prefetch=1,
            grid=(S, num_batch_blocks, tiles_per_split),
            in_specs=[
                pl.BlockSpec((Nb, C, tile), data_map),
                pl.BlockSpec((Nb, 1, tile), data_map),
            ],
            out_specs=pl.BlockSpec(
                (1, 2), lambda s, bn, t, scal_ref: (s, 0),
                memory_space=pltpu.MemorySpace.SMEM,
            ),
            scratch_shapes=[
                pltpu.VMEM((1, tile), jnp.float32),   # intersection lanes
                pltpu.VMEM((1, tile), jnp.float32),   # one-hot-count lanes
            ],
        ),
        compiler_params=pltpu.CompilerParams(
            dimension_semantics=("parallel", "arbitrary", "arbitrary"),
            vmem_limit_bytes=int(vmem_limit),
        ),
    )(scal, logits, labels)

    inter = jnp.sum(partials[:, 0])
    onehot_sum = jnp.sum(partials[:, 1])
    softmax_sum = jnp.float32(N * HW)   # analytic: softmax sums to 1 per pixel
    return 1.0 - (2.0 * inter + smooth) / (softmax_sum + onehot_sum + smooth)


def _dice_loss_ref(output, target, smooth=1.0, ignore_index=255):
    """Pure-JAX reference mirroring the PyTorch forward."""
    N, C, H, W = output.shape
    target = target.astype(jnp.int32)
    tmin = jnp.min(target)
    tmax = jnp.max(target)
    in_py_range = jnp.logical_and(ignore_index >= tmin, ignore_index < tmax)
    has_ignore = jnp.any(target == ignore_index)
    do_replace = jnp.logical_and(jnp.logical_not(in_py_range), has_ignore)
    target = jnp.where(
        jnp.logical_and(do_replace, target == ignore_index), tmin, target
    )
    one_hot = jax.nn.one_hot(target, C, axis=1, dtype=jnp.float32)  # (N,C,H,W)
    probs = jax.nn.softmax(output.astype(jnp.float32), axis=1)
    of, tf = probs.reshape(-1), one_hot.reshape(-1)
    inter = jnp.sum(of * tf)
    return 1.0 - (2.0 * inter + smooth) / (jnp.sum(of) + jnp.sum(tf) + smooth)


if __name__ == "__main__":
    key = jax.random.PRNGKey(0)
    k1, k2, k3 = jax.random.split(key, 3)

    N, C, H, W = 2, 4, 16, 16
    logits = jax.random.normal(k1, (N, C, H, W), dtype=jnp.float32)
    labels = jax.random.randint(k2, (N, H, W), 0, C, dtype=jnp.int32)
    # sprinkle a few ignore_index pixels to exercise the replacement path
    ignore_mask = jax.random.uniform(k3, (N, H, W)) < 0.02
    labels = jnp.where(ignore_mask, 255, labels)

    loss = jax.block_until_ready(dice_loss(logits, labels))
    ref = jax.block_until_ready(_dice_loss_ref(logits, labels))
    assert jnp.allclose(loss, ref, atol=1e-5, rtol=1e-5), (loss, ref)

    print("KERNEL_OK")
</pallas_src>

<mosaic_0001>
module attributes {stable_mosaic.version = 11 : i64} {
  func.func @_dice_kernel(%arg0: i32, %arg1: i32, %arg2: i32, %arg3: memref<2xi32, #tpu.memory_space<smem>>, %arg4: memref<2x4x256xf32, #tpu.memory_space<vmem>>, %arg5: memref<2x1x256xi32, #tpu.memory_space<vmem>>, %arg6: memref<1x2xf32, #tpu.memory_space<smem>>, %arg7: memref<1x256xf32, #tpu.memory_space<vmem>>, %arg8: memref<1x256xf32, #tpu.memory_space<vmem>>) attributes {dimension_semantics = [#tpu.dimension_semantics<parallel>, #tpu.dimension_semantics<arbitrary>, #tpu.dimension_semantics<arbitrary>], iteration_bounds = array<i64: 1, 1, 1>, scalar_prefetch = 1 : i64, scratch_operands = 2 : i64, tpu.core_type = #tpu.core_type<tc>, window_params = [{transform_indices = @transform_0, window_bounds = array<i64: 2, 4, 256>}, {transform_indices = @transform_1, window_bounds = array<i64: 2, 1, 256>}, {transform_indices = @transform_2, window_bounds = array<i64: 1, 2>}]} {
    %c0_i32 = arith.constant 0 : i32
    %0 = arith.cmpi eq, %arg1, %c0_i32 : i32
    %c0_i32_0 = arith.constant 0 : i32
    %1 = arith.cmpi eq, %arg2, %c0_i32_0 : i32
    %2 = arith.andi %0, %1 : i1
    %3 = arith.extui %2 : i1 to i32
    %c0_i32_1 = arith.constant 0 : i32
    %4 = arith.cmpi ne, %3, %c0_i32_1 : i32
    scf.if %4 {
      %cst_31 = arith.constant 0.000000e+00 : f32
      %71 = vector.broadcast %cst_31 : f32 to vector<1x256xf32>
      %c0_32 = arith.constant 0 : index
      %c0_33 = arith.constant 0 : index
      %72 = vector.load %arg7[%c0_32, %c0_33] : memref<1x256xf32, #tpu.memory_space<vmem>>, vector<1x256xf32>
      tpu.vector_store %arg7[%c0_32, %c0_33], %71 {strides = array<i32>} : memref<1x256xf32, #tpu.memory_space<vmem>>, vector<1x256xf32>,
      %cst_34 = arith.constant 0.000000e+00 : f32
      %73 = vector.broadcast %cst_34 : f32 to vector<1x256xf32>
      %c0_35 = arith.constant 0 : index
      %c0_36 = arith.constant 0 : index
      %74 = vector.load %arg8[%c0_35, %c0_36] : memref<1x256xf32, #tpu.memory_space<vmem>>, vector<1x256xf32>
      tpu.vector_store %arg8[%c0_35, %c0_36], %73 {strides = array<i32>} : memref<1x256xf32, #tpu.memory_space<vmem>>, vector<1x256xf32>,
    } else {
    }
    %c0 = arith.constant 0 : index
    %c0_2 = arith.constant 0 : index
    %c0_3 = arith.constant 0 : index
    %5 = vector.load %arg4[%c0, %c0_2, %c0_3] : memref<2x4x256xf32, #tpu.memory_space<vmem>>, vector<2x4x256xf32>
    %c0_4 = arith.constant 0 : index
    %c0_5 = arith.constant 0 : index
    %c0_6 = arith.constant 0 : index
    %6 = vector.load %arg5[%c0_4, %c0_5, %c0_6] : memref<2x1x256xi32, #tpu.memory_space<vmem>>, vector<2x1x256xi32>
    %c0_7 = arith.constant 0 : index
    %7 = memref.load %arg3[%c0_7] : memref<2xi32, #tpu.memory_space<smem>>
    %c1 = arith.constant 1 : index
    %8 = memref.load %arg3[%c1] : memref<2xi32, #tpu.memory_space<smem>>
    %c0_i32_8 = arith.constant 0 : i32
    %9 = arith.cmpi ne, %8, %c0_i32_8 : i32
    %c255_i32 = arith.constant 255 : i32
    %10 = vector.broadcast %c255_i32 : i32 to vector<2x1x256xi32>
    %11 = arith.cmpi eq, %6, %10 : vector<2x1x256xi32>
    %12 = vector.broadcast %9 : i1 to vector<2x1x256xi1>
    %13 = arith.andi %12, %11 : vector<2x1x256xi1>
    %14 = vector.broadcast %7 : i32 to vector<2x1x256xi32>
    %15 = arith.select %13, %14, %6 : vector<2x1x256xi1>, vector<2x1x256xi32>
    %c1_i32 = arith.constant 1 : i32
    %16 = arith.muli %arg0, %c1_i32 : i32
    %17 = arith.addi %16, %arg2 : i32
    %18 = tpu.iota {dimensions = array<i32: 2>} : vector<1x1x256xi32>
    %c256_i32 = arith.constant 256 : i32
    %19 = arith.muli %17, %c256_i32 : i32
    %20 = vector.broadcast %19 : i32 to vector<1x1x256xi32>
    %21 = arith.addi %20, %18 : vector<1x1x256xi32>
    %c256_i32_9 = arith.constant 256 : i32
    %22 = vector.broadcast %c256_i32_9 : i32 to vector<1x1x256xi32>
    %23 = arith.cmpi slt, %21, %22 : vector<1x1x256xi32>
    %cst = arith.constant dense<0xFF800000> : vector<2x256xf32>
    %24 = vector.multi_reduction <maximumf>, %5, %cst [1] : vector<2x4x256xf32> to vector<2x256xf32>
    %25 = vector.shape_cast %24 : vector<2x256xf32> to vector<2x1x256xf32>
    %26 = vector.broadcast %25 : vector<2x1x256xf32> to vector<2x4x256xf32>
    %27 = arith.subf %5, %26 : vector<2x4x256xf32>
    %28 = math.exp %27 : vector<2x4x256xf32>
    %cst_10 = arith.constant dense<0.000000e+00> : vector<2x256xf32>
    %29 = vector.multi_reduction <add>, %28, %cst_10 [1] : vector<2x4x256xf32> to vector<2x256xf32>
    %30 = vector.shape_cast %29 : vector<2x256xf32> to vector<2x1x256xf32>
    %31 = tpu.iota {dimensions = array<i32: 1>} : vector<2x4x256xi32>
    %32 = vector.broadcast %15 : vector<2x1x256xi32> to vector<2x4x256xi32>
    %33 = arith.cmpi eq, %31, %32 : vector<2x4x256xi32>
    %cst_11 = arith.constant 0.000000e+00 : f32
    %34 = vector.broadcast %cst_11 : f32 to vector<2x4x256xf32>
    %35 = arith.select %33, %28, %34 : vector<2x4x256xi1>, vector<2x4x256xf32>
    %cst_12 = arith.constant dense<0.000000e+00> : vector<2x256xf32>
    %36 = vector.multi_reduction <add>, %35, %cst_12 [1] : vector<2x4x256xf32> to vector<2x256xf32>
    %37 = vector.shape_cast %36 : vector<2x256xf32> to vector<2x1x256xf32>
    %38 = tpu.reciprocal %30 {approx = true} : vector<2x1x256xf32> -> vector<2x1x256xf32>
    %39 = arith.mulf %30, %38 : vector<2x1x256xf32>
    %cst_13 = arith.constant 2.000000e+00 : f32
    %40 = vector.broadcast %cst_13 : f32 to vector<2x1x256xf32>
    %41 = arith.subf %40, %39 : vector<2x1x256xf32>
    %42 = arith.mulf %38, %41 : vector<2x1x256xf32>
    %43 = arith.mulf %37, %42 : vector<2x1x256xf32>
    %cst_14 = arith.constant 0.000000e+00 : f32
    %44 = vector.shape_cast %23 : vector<1x1x256xi1> to vector<1x1x256xi1>
    %45 = vector.broadcast %44 : vector<1x1x256xi1> to vector<2x1x256xi1>
    %46 = vector.broadcast %cst_14 : f32 to vector<2x1x256xf32>
    %47 = arith.select %45, %43, %46 : vector<2x1x256xi1>, vector<2x1x256xf32>
    %c0_i32_15 = arith.constant 0 : i32
    %48 = vector.broadcast %c0_i32_15 : i32 to vector<2x1x256xi32>
    %49 = arith.cmpi sge, %15, %48 : vector<2x1x256xi32>
    %c4_i32 = arith.constant 4 : i32
    %50 = vector.broadcast %c4_i32 : i32 to vector<2x1x256xi32>
    %51 = arith.cmpi slt, %15, %50 : vector<2x1x256xi32>
    %52 = arith.andi %49, %51 : vector<2x1x256xi1>
    %53 = vector.broadcast %23 : vector<1x1x256xi1> to vector<2x1x256xi1>
    %54 = arith.andi %53, %52 : vector<2x1x256xi1>
    %cst_16 = arith.constant 1.000000e+00 : f32
    %cst_17 = arith.constant 0.000000e+00 : f32
    %55 = vector.broadcast %cst_16 : f32 to vector<2x1x256xf32>
    %56 = vector.broadcast %cst_17 : f32 to vector<2x1x256xf32>
    %57 = arith.select %54, %55, %56 : vector<2x1x256xi1>, vector<2x1x256xf32>
    %c0_18 = arith.constant 0 : index
    %c0_19 = arith.constant 0 : index
    %58 = vector.load %arg7[%c0_18, %c0_19] : memref<1x256xf32, #tpu.memory_space<vmem>>, vector<1x256xf32>
    %cst_20 = arith.constant dense<0.000000e+00> : vector<1x256xf32>
    %59 = vector.multi_reduction <add>, %47, %cst_20 [0] : vector<2x1x256xf32> to vector<1x256xf32>
    %60 = arith.addf %58, %59 : vector<1x256xf32>
    %c0_21 = arith.constant 0 : index
    %c0_22 = arith.constant 0 : index
    %61 = vector.load %arg7[%c0_21, %c0_22] : memref<1x256xf32, #tpu.memory_space<vmem>>, vector<1x256xf32>
    tpu.vector_store %arg7[%c0_21, %c0_22], %60 {strides = array<i32>} : memref<1x256xf32, #tpu.memory_space<vmem>>, vector<1x256xf32>,
    %c0_23 = arith.constant 0 : index
    %c0_24 = arith.constant 0 : index
    %62 = vector.load %arg8[%c0_23, %c0_24] : memref<1x256xf32, #tpu.memory_space<vmem>>, vector<1x256xf32>
    %cst_25 = arith.constant dense<0.000000e+00> : vector<1x256xf32>
    %63 = vector.multi_reduction <add>, %57, %cst_25 [0] : vector<2x1x256xf32> to vector<1x256xf32>
    %64 = arith.addf %62, %63 : vector<1x256xf32>
    %c0_26 = arith.constant 0 : index
    %c0_27 = arith.constant 0 : index
    %65 = vector.load %arg8[%c0_26, %c0_27] : memref<1x256xf32, #tpu.memory_space<vmem>>, vector<1x256xf32>
    tpu.vector_store %arg8[%c0_26, %c0_27], %64 {strides = array<i32>} : memref<1x256xf32, #tpu.memory_space<vmem>>, vector<1x256xf32>,
    %c0_i32_28 = arith.constant 0 : i32
    %66 = arith.cmpi eq, %arg1, %c0_i32_28 : i32
    %c0_i32_29 = arith.constant 0 : i32
    %67 = arith.cmpi eq, %arg2, %c0_i32_29 : i32
    %68 = arith.andi %66, %67 : i1
    %69 = arith.extui %68 : i1 to i32
    %c0_i32_30 = arith.constant 0 : i32
    %70 = arith.cmpi ne, %69, %c0_i32_30 : i32
    scf.if %70 {
      %c0_31 = arith.constant 0 : index
      %c0_32 = arith.constant 0 : index
      %71 = vector.load %arg7[%c0_31, %c0_32] : memref<1x256xf32, #tpu.memory_space<vmem>>, vector<1x256xf32>
      %72 = vector.shape_cast %71 : vector<1x256xf32> to vector<1x1x256xf32>
      %cst_33 = arith.constant dense<0.000000e+00> : vector<1xf32>
      %73 = vector.multi_reduction <add>, %72, %cst_33 [1, 2] : vector<1x1x256xf32> to vector<1xf32>
      %74 = vector.shape_cast %73 : vector<1xf32> to vector<1x1x1xf32>
      %75 = vector.extract %74[0, 0, 0] : f32 from vector<1x1x1xf32>
      %c0_34 = arith.constant 0 : index
      %c0_35 = arith.constant 0 : index
      %76 = memref.load %arg6[%c0_34, %c0_35] : memref<1x2xf32, #tpu.memory_space<smem>>
      memref.store %75, %arg6[%c0_34, %c0_35] : memref<1x2xf32, #tpu.memory_space<smem>>
      %c0_36 = arith.constant 0 : index
      %c0_37 = arith.constant 0 : index
      %77 = vector.load %arg8[%c0_36, %c0_37] : memref<1x256xf32, #tpu.memory_space<vmem>>, vector<1x256xf32>
      %78 = vector.shape_cast %77 : vector<1x256xf32> to vector<1x1x256xf32>
      %cst_38 = arith.constant dense<0.000000e+00> : vector<1xf32>
      %79 = vector.multi_reduction <add>, %78, %cst_38 [1, 2] : vector<1x1x256xf32> to vector<1xf32>
      %80 = vector.shape_cast %79 : vector<1xf32> to vector<1x1x1xf32>
      %81 = vector.extract %80[0, 0, 0] : f32 from vector<1x1x1xf32>
      %c0_39 = arith.constant 0 : index
      %c1_40 = arith.constant 1 : index
      %82 = memref.load %arg6[%c0_39, %c1_40] : memref<1x2xf32, #tpu.memory_space<smem>>
      memref.store %81, %arg6[%c0_39, %c1_40] : memref<1x2xf32, #tpu.memory_space<smem>>
    } else {
    }
    return
  }
  func.func @transform_0(%arg0: i32, %arg1: i32, %arg2: i32, %arg3: memref<2xi32, #tpu.memory_space<smem>>) -> (i32, i32, i32) {
    %c1_i32 = arith.constant 1 : i32
    %0 = arith.muli %arg0, %c1_i32 : i32
    %1 = arith.addi %0, %arg2 : i32
    %c0_i32 = arith.constant 0 : i32
    %2 = arith.minsi %1, %c0_i32 : i32
    %c0_i32_0 = arith.constant 0 : i32
    %c0_i32_1 = arith.constant 0 : i32
    return %arg1, %c0_i32_0, %2 : i32, i32, i32
  }
  func.func @transform_1(%arg0: i32, %arg1: i32, %arg2: i32, %arg3: memref<2xi32, #tpu.memory_space<smem>>) -> (i32, i32, i32) {
    %c1_i32 = arith.constant 1 : i32
    %0 = arith.muli %arg0, %c1_i32 : i32
    %1 = arith.addi %0, %arg2 : i32
    %c0_i32 = arith.constant 0 : i32
    %2 = arith.minsi %1, %c0_i32 : i32
    %c0_i32_0 = arith.constant 0 : i32
    %c0_i32_1 = arith.constant 0 : i32
    return %arg1, %c0_i32_0, %2 : i32, i32, i32
  }
  func.func @transform_2(%arg0: i32, %arg1: i32, %arg2: i32, %arg3: memref<2xi32, #tpu.memory_space<smem>>) -> (i32, i32) {
    %c0_i32 = arith.constant 0 : i32
    %c0_i32_0 = arith.constant 0 : i32
    return %arg0, %c0_i32 : i32, i32
  }
}

</mosaic_0001>

<bundles_post_ra>
// kernel: tpu_custom_call.1
= control target key start
LH: loop header
LB: loop body
LE: loop exit
PB: predicated region body
PF: predicated region fallthrough
CT: control target
= control target key end

     0   :  { %s514_s15 = smov [#allocation5]   ;;  %s630_s0 = inlined_call_operand.hbm [shape: s32[2], index: 0, kind: input, shape index: {}]   ;;  %s631_s1 = inlined_call_operand.hbm [shape: f32[2,4,256], index: 1, kind: input, shape index: {}]   ;;  %s632_s2 = inlined_call_operand.hbm [shape: s32[2,1,256], index: 2, kind: input, shape index: {}]   ;;  %s633_s3 = inlined_call_operand.hbm [shape: f32[1,2], index: 3, kind: output, shape index: {}]  }
   0x1   :  { %s9_s14 = sshll.u32 %s630_s0, 4  ;;  %s10_s14 = int_to_ptr.hbm [resolvable:$true] %s9_s14 }
   0x2   :  { %12 = dma.hbm_to_smem %s10_s14, 16, %s514_s15, [#allocation4] }
   0x3   :  { %506 = dma.done.wait [#allocation4], 16 }
   0x4   :  { %507 = vsyncadd [#allocation4], 4294967280 }
   0x5   :  { %15 = sfence }
   0x6   :  { %16 = vsyncpa [#allocation7], 0 }
   0x7   :  { %17 = vsyncpa [#allocation10], 0 }
   0x8   :  { %18 = vsyncpa [#allocation8], 0  ;;  %s29_s18 = sshll.u32 %s631_s1, 4  ;;  %s515_s19 = smov [#allocation6]   ;;  %s30_s18 = int_to_ptr.hbm [resolvable:$true] %s29_s18 }
   0x9   :  { %s31_s20 = sshll.u32 %s515_s19, 4  ;;  %s47_s0 = sshll.u32 %s632_s2, 4  ;;  %s32_s20 = int_to_ptr.vmem [resolvable:$true] %s31_s20  ;;  %s48_s0 = int_to_ptr.hbm [resolvable:$true] %s47_s0 }
   0xa   :  { %s516_s23 = smov 128   ;;  %s517_s24 = smov 8  }
   0xb   :  { %37 = dma.hbm_to_vmem [thread:$0]  %s30_s18, 256, %s32_s20, [#allocation7], %s516_s23, %s516_s23, %s517_s24  }
   0xc   :  { %s518_s25 = smov [#allocation9]   ;;  %s519_s27 = smov 32  }
   0xd   :  { %s49_s26 = sshll.u32 %s518_s25, 4  ;;  %s520_s28 = smov 2   ;;  %s50_s26 = int_to_ptr.vmem [resolvable:$true] %s49_s26 }
   0xe   :  { %55 = dma.hbm_to_vmem [thread:$0]  %s48_s0, 64, %s50_s26, [#allocation10], %s519_s27, %s519_s27, %s520_s28  }
   0xf   :  { %508 = dma.done.wait [#allocation7], 256  }
  0x10   :  { %509 = vsyncadd [#allocation7], 4294967040 }
  0x11   :  { %510 = dma.done.wait [#allocation10], 64  }
  0x12   :  { %511 = vsyncadd [#allocation10], 4294967232  ;;  %v78_v0 = vlaneseq  ;;  %v521_v2 = vmov 0.0   ;;  %v84_v3 = vld [vmem:[#allocation6] sm:$0xff]  ;;  %v85_v4 = vld [vmem:[#allocation6 + $0x8] sm:$0xff]  ;;  %vm124_vm1 = vcmask 1043456  }
  0x13   :  { %113 = vst [vmem:[#allocation1] ss:$2 sm:$0xff] %v84_v3  ;;  %s407_s1 = sld [smem:[#allocation5 + $0x1]]  ;;  %v86_v45 = vld [vmem:[#allocation9] sm:$0x3]  ;;  %s391_s6 = sshll.u32 %s633_s3, 4  ;;  %s392_s6 = int_to_ptr.hbm [resolvable:$true] %s391_s6 }
  0x14   :  { %vm554_vm0 = vcmp.lt.s32.totalorder %v78_v0, 256  ;;  %117 = vst [vmem:[#allocation1 + $0x10] ss:$2 sm:$0xff] %v85_v4  ;;  %s88_s29 = sld [smem:[#allocation5]]  ;;  %v87_v47 = vld [vmem:[#allocation9 + $0x2] sm:$0x3] }
  0x15   :  { %82 = vst.msk [vmem:[#allocation2] sm:$0x3] %vm554_vm0, %v521_v2  ;;  %vm91_vm2 = vcmp.eq.s32.totalorder %v86_v45, 255  ;;  %vm92_vm4 = vcmp.eq.s32.totalorder %v87_v47, 255  ;;  %v211_v53 = vshrl.u32 %v78_v0, 7  ;;  %s523_s8 = smov [#allocation11]  }
  0x16   :  { %83 = vst.msk [vmem:[#allocation3] sm:$0x3] %vm554_vm0, %v521_v2 }
  0x19   :  { %p90_p0 = scmp.ne.s32.totalorder %s407_s1, 0 }
  0x1a   :  { %v114_v5 = vld.sshfl [vmem:[#allocation1] sm:$0xff pattern:$0x75316420]  ;;  %v115_v6 = vld.sshfl [vmem:[#allocation1 + $0x8] sm:$0xff pattern:$0x75316420]  ;;  %v98_v50 = vstv %s88_s29 }
  0x1b   :  { %v118_v7 = vld.sshfl [vmem:[#allocation1 + $0x10] sm:$0xff pattern:$0x75316420]  ;;  %v119_v8 = vld.sshfl [vmem:[#allocation1 + $0x18] sm:$0xff pattern:$0x75316420] }
  0x1c   :  { %v125_v9 = vsel %vm124_vm1, %v114_v5, -inf  ;;  %v132_v10 = vsel %vm124_vm1, %v115_v6, -inf  ;;  %v139_v11 = vsel %vm124_vm1, %v118_v7, -inf  ;;  %v146_v12 = vsel %vm124_vm1, %v119_v8, -inf  ;;  %s93_s2 = scalar_select %p90_p0, 1, 0 }
  0x1d   :  { %v126_v13 = vrot.slane %v125_v9, 4  ;;  %v133_v14 = vrot.slane %v132_v10, 4  ;;  %v140_v15 = vrot.slane %v139_v11, 4  ;;  %v147_v16 = vrot.slane %v146_v12, 4 }
  0x1e   :  { %v94_v46 = vstv %s93_s2 }
  0x1f   :  { %v127_v17 = vmax.f32 %v125_v9, %v126_v13  ;;  %v134_v18 = vmax.f32 %v132_v10, %v133_v14  ;;  %v141_v19 = vmax.f32 %v139_v11, %v140_v15  ;;  %v148_v20 = vmax.f32 %v146_v12, %v147_v16 }
  0x20   :  { %vm95_vm3 = vcmp.eq.s32.totalorder %v94_v46, 1 }
  0x21   :  { %v128_v21 = vrot.slane %v127_v17, 2  ;;  %v135_v22 = vrot.slane %v134_v18, 2  ;;  %v142_v23 = vrot.slane %v141_v19, 2  ;;  %v149_v24 = vrot.slane %v148_v20, 2  ;;  %vm96_vm5 = vmand %vm95_vm3, %vm91_vm2 }
  0x22   :  { %vm97_vm6 = vmand %vm95_vm3, %vm92_vm4  ;;  %v99_v51 = vsel %vm96_vm5, %v98_v50, %v86_v45 }
  0x23   :  { %v129_v25 = vmax.f32 %v127_v17, %v128_v21  ;;  %v136_v26 = vmax.f32 %v134_v18, %v135_v22  ;;  %v143_v27 = vmax.f32 %v141_v19, %v142_v23  ;;  %v150_v28 = vmax.f32 %v148_v20, %v149_v24 }
  0x24   :  { %v100_v52 = vsel %vm97_vm6, %v98_v50, %v87_v47  ;;  %v212_v54 = vperm.slane %v99_v51, 0  ;;  %v213_v55 = vperm.slane %v99_v51, 1  ;;  %vm291_vm7 = vcmp.ge.s32.totalorder %v99_v51, 0 }
  0x25   :  { %v130_v29 = vrot.slane %v129_v25, 1  ;;  %v137_v30 = vrot.slane %v136_v26, 1  ;;  %v144_v31 = vrot.slane %v143_v27, 1  ;;  %v151_v32 = vrot.slane %v150_v28, 1 }
  0x26   :  { %v214_v56 = vperm.slane %v100_v52, 0  ;;  %v215_v57 = vperm.slane %v100_v52, 1  ;;  %vm292_vm8 = vcmp.ge.s32.totalorder %v100_v52, 0  ;;  %vm293_vm9 = vcmp.lt.s32.totalorder %v99_v51, 4 }
  0x27   :  { %v131_v33 = vmax.f32 %v129_v25, %v130_v29  ;;  %v138_v34 = vmax.f32 %v136_v26, %v137_v30  ;;  %v145_v35 = vmax.f32 %v143_v27, %v144_v31  ;;  %v152_v36 = vmax.f32 %v150_v28, %v151_v32  ;;  %vm295_vm11 = vmand %vm291_vm7, %vm293_vm9 }
  0x28   :  { %vm294_vm10 = vcmp.lt.s32.totalorder %v100_v52, 4  ;;  %vm575_vm12 = vcmp.eq.s32.totalorder %v211_v53, %v213_v55  ;;  %vm579_vm13 = vcmp.eq.s32.totalorder %v211_v53, %v215_v57  ;;  %vm583_vm15 = vcmp.eq.s32.totalorder %v211_v53, %v212_v54 }
  0x29   :  { %v157_v37 = vrot.slane %v138_v34, 4  ;;  %v158_v38 = vrot.slane %v152_v36, 4  ;;  %vm296_vm14 = vmand %vm292_vm8, %vm294_vm10  ;;  %vm587_vm2 = vcmp.eq.s32.totalorder %v211_v53, %v214_v56  ;;  %v522_v20 = vmov 0  }
  0x2a   :  { %v297_v21 = vsel %vm295_vm11, 1, %v522_v20  ;;  %v298_v22 = vsel %vm296_vm14, 1, %v522_v20  ;;  %vm321_vm6 = vcmask 1040384  }
  0x2b   :  { %v159_v39 = vsel %vm124_vm1, %v131_v33, %v157_v37  ;;  %v160_v40 = vsel %vm124_vm1, %v145_v35, %v158_v38  ;;  %v299_v51 = vperm.slane %v297_v21, 0  ;;  %v300_v52 = vperm.slane %v297_v21, 1 }
  0x2c   :  { %v163_v41 = vsub.f32 %v84_v3, %v159_v39  ;;  %v164_v42 = vsub.f32 %v85_v4, %v160_v40  ;;  %v301_v53 = vperm.slane %v298_v22, 0 }
  0x2d   :  { %vm303_vm3 = vcmp.ne.s32.totalorder %v299_v51, 0  ;;  %vm603_vm4 = vcmp.ne.s32.totalorder %v300_v52, 0 }
  0x2e   :  { %v165_v43 = vmul.f32 1.442695, %v163_v41  ;;  %v167_v44 = vmul.f32 1.442695, %v164_v42 }
  0x30   :  { %422 = vpow2.f32 %v165_v43 }
  0x31   :  { %424 = vpow2.f32 %v167_v44 }
  0x36   :  { %v423_v48 = vpop.eup %422 }
  0x37   :  { %v425_v49 = vpop.eup %424  ;;  %171 = vst [vmem:[#allocation1] ss:$2 sm:$0xff] %v423_v48 }
  0x38   :  { %175 = vst [vmem:[#allocation1 + $0x10] ss:$2 sm:$0xff] %v425_v49 }
  0x3e   :  { %v172_v58 = vld.sshfl [vmem:[#allocation1] sm:$0xff pattern:$0x75316420]  ;;  %v173_v59 = vld.sshfl [vmem:[#allocation1 + $0x8] sm:$0xff pattern:$0x75316420] }
  0x3f   :  { %v176_v60 = vld.sshfl [vmem:[#allocation1 + $0x10] sm:$0xff pattern:$0x75316420]  ;;  %v177_v61 = vld.sshfl [vmem:[#allocation1 + $0x18] sm:$0xff pattern:$0x75316420] }
  0x40   :  { %v182_v62 = vsel %vm124_vm1, %v172_v58, 0.0  ;;  %v189_v63 = vsel %vm124_vm1, %v173_v59, 0.0  ;;  %v196_v3 = vsel %vm124_vm1, %v176_v60, 0.0  ;;  %v203_v4 = vsel %vm124_vm1, %v177_v61, 0.0  ;;  %220 = vst [vmem:[#allocation1] ss:$2 sm:$0xff] %v423_v48 }
  0x41   :  { %v183_v5 = vrot.slane %v182_v62, 4  ;;  %v190_v6 = vrot.slane %v189_v63, 4  ;;  %v197_v0 = vrot.slane %v196_v3, 4  ;;  %v204_v7 = vrot.slane %v203_v4, 4  ;;  %224 = vst [vmem:[#allocation1 + $0x10] ss:$2 sm:$0xff] %v425_v49 }
  0x42   :  { %v302_v58 = vperm.slane %v298_v22, 1 }
  0x43   :  { %v184_v8 = vadd.f32 %v183_v5, %v182_v62  ;;  %v191_v9 = vadd.f32 %v190_v6, %v189_v63  ;;  %v198_v10 = vadd.f32 %v197_v0, %v196_v3  ;;  %v205_v11 = vadd.f32 %v204_v7, %v203_v4 }
  0x44   :  { %vm306_vm5 = vcmp.ne.s32.totalorder %v302_v58, 0  ;;  %v311_v6 = vsel %vm303_vm3, 1.0, %v521_v2 }
  0x45   :  { %v185_v14 = vrot.slane %v184_v8, 2  ;;  %v192_v15 = vrot.slane %v191_v9, 2  ;;  %v199_v16 = vrot.slane %v198_v10, 2  ;;  %v206_v17 = vrot.slane %v205_v11, 2 }
  0x46   :  { %v314_v13 = vsel %vm306_vm5, 1.0, %v521_v2 }
  0x47   :  { %v186_v23 = vadd.f32 %v185_v14, %v184_v8  ;;  %v193_v24 = vadd.f32 %v192_v15, %v191_v9  ;;  %v200_v25 = vadd.f32 %v199_v16, %v198_v10  ;;  %v207_v26 = vadd.f32 %v206_v17, %v205_v11  ;;  %v221_v27 = vld.sshfl [vmem:[#allocation1] sm:$0xff pattern:$0x75316420]  ;;  %v222_v28 = vld.sshfl [vmem:[#allocation1 + $0x8] sm:$0xff pattern:$0x75316420] }
  0x48   :  { %v225_v29 = vld.sshfl [vmem:[#allocation1 + $0x10] sm:$0xff pattern:$0x75316420]  ;;  %v226_v30 = vld.sshfl [vmem:[#allocation1 + $0x18] sm:$0xff pattern:$0x75316420] }
  0x49   :  { %v187_v31 = vrot.slane %v186_v23, 1  ;;  %v194_v32 = vrot.slane %v193_v24, 1  ;;  %v201_v33 = vrot.slane %v200_v25, 1  ;;  %v208_v34 = vrot.slane %v207_v26, 1 }
  0x4a   :  { %v231_v35 = vsel %vm583_vm15, %v221_v27, 0.0  ;;  %v232_v36 = vsel %vm575_vm12, %v222_v28, 0.0  ;;  %v233_v37 = vsel %vm587_vm2, %v225_v29, 0.0  ;;  %v234_v38 = vsel %vm579_vm13, %v226_v30, 0.0 }
  0x4b   :  { %v188_v39 = vadd.f32 %v187_v31, %v186_v23  ;;  %v195_v40 = vadd.f32 %v194_v32, %v193_v24  ;;  %v202_v41 = vadd.f32 %v201_v33, %v200_v25  ;;  %v209_v42 = vadd.f32 %v208_v34, %v207_v26  ;;  %v330_v34 = vld [vmem:[#allocation3] sm:$0x3] }
  0x4c   :  { %v235_v43 = vsel %vm124_vm1, %v231_v35, 0.0  ;;  %v242_v44 = vsel %vm124_vm1, %v232_v36, 0.0  ;;  %v249_v45 = vsel %vm124_vm1, %v233_v37, 0.0  ;;  %v256_v46 = vsel %vm124_vm1, %v234_v38, 0.0 }
  0x4d   :  { %v236_v47 = vrot.slane %v235_v43, 4  ;;  %v243_v48 = vrot.slane %v242_v44, 4  ;;  %v250_v49 = vrot.slane %v249_v45, 4  ;;  %v257_v50 = vrot.slane %v256_v46, 4 }
  0x4e   :  { %426 = vrcp.f32 %v188_v39  ;;  %vm305_vm1 = vcmp.ne.s32.totalorder %v301_v53, 0  ;;  %v312_v8 = vsel %vm603_vm4, 1.0, %v521_v2  ;;  %v331_v16 = vsel %vm321_vm6, %v311_v6, 0.0 }
  0x4f   :  { %v237_v54 = vadd.f32 %v236_v47, %v235_v43  ;;  %v244_v55 = vadd.f32 %v243_v48, %v242_v44  ;;  %v251_v56 = vadd.f32 %v250_v49, %v249_v45  ;;  %v258_v57 = vadd.f32 %v257_v50, %v256_v46  ;;  %v315_v49 = vld [vmem:[#allocation2] sm:$0x3] }
  0x50   :  { %428 = vrcp.f32 %v195_v40  ;;  %v313_v9 = vsel %vm305_vm1, 1.0, %v521_v2  ;;  %v334_v18 = vsel %vm321_vm6, %v312_v8, 0.0  ;;  %v335_v22 = vsel %vm321_vm6, %v314_v13, 0.0 }
  0x51   :  { %v238_v60 = vrot.slane %v237_v54, 2  ;;  %v245_v61 = vrot.slane %v244_v55, 2  ;;  %v252_v62 = vrot.slane %v251_v56, 2  ;;  %v259_v63 = vrot.slane %v258_v57, 2 }
  0x52   :  { %430 = vrcp.f32 %v202_v41  ;;  %v332_v17 = vsel %vm321_vm6, %v313_v9, 0.0  ;;  %v336_v26 = vadd.f32 %v335_v22, %v334_v18 }
  0x53   :  { %v239_v3 = vadd.f32 %v238_v60, %v237_v54  ;;  %v246_v4 = vadd.f32 %v245_v61, %v244_v55  ;;  %v253_v5 = vadd.f32 %v252_v62, %v251_v56  ;;  %v260_v7 = vadd.f32 %v259_v63, %v258_v57 }
  0x54   :  { %v427_v0 = vpop.eup %426  ;;  %432 = vrcp.f32 %v209_v42  ;;  %v333_v25 = vadd.f32 %v332_v17, %v331_v16  ;;  %v339_v35 = vrot.slane %v336_v26, 7 }
  0x55   :  { %v240_v10 = vrot.slane %v239_v3, 1  ;;  %v247_v11 = vrot.slane %v246_v4, 1  ;;  %v254_v12 = vrot.slane %v253_v5, 1  ;;  %v267_v15 = vmul.f32 %v427_v0, %v188_v39 }
  0x56   :  { %v429_v14 = vpop.eup %428  ;;  %v261_v23 = vrot.slane %v260_v7, 1 }
  0x57   :  { %v268_v20 = vmul.f32 %v429_v14, %v195_v40  ;;  %v271_v21 = vsub.f32 2.0, %v267_v15  ;;  %v241_v28 = vadd.f32 %v240_v10, %v239_v3  ;;  %v248_v2 = vadd.f32 %v247_v11, %v246_v4 }
  0x58   :  { %v431_v19 = vpop.eup %430  ;;  %v255_v29 = vadd.f32 %v254_v12, %v253_v5  ;;  %v262_v37 = vadd.f32 %v261_v23, %v260_v7  ;;  %v340_v40 = vsel %vm321_vm6, %v333_v25, %v339_v35 }
  0x59   :  { %v269_v24 = vmul.f32 %v431_v19, %v202_v41  ;;  %v272_v30 = vsub.f32 2.0, %v268_v20  ;;  %v275_v33 = vmul.f32 %v427_v0, %v271_v21  ;;  %v342_v43 = vadd.f32 %v340_v40, %v330_v34 }
  0x5a   :  { %v433_v27 = vpop.eup %432 }
  0x5b   :  { %v270_v31 = vmul.f32 %v433_v27, %v209_v42  ;;  %v273_v32 = vsub.f32 2.0, %v269_v24  ;;  %v276_v36 = vmul.f32 %v429_v14, %v272_v30  ;;  %v279_v44 = vmul.f32 %v275_v33, %v241_v28  ;;  %343 = vst.msk [vmem:[#allocation3] sm:$0x3] %vm554_vm0, %v342_v43 }
  0x5d   :  { %v274_v38 = vsub.f32 2.0, %v270_v31  ;;  %v277_v39 = vmul.f32 %v431_v19, %v273_v32  ;;  %v280_v45 = vmul.f32 %v276_v36, %v248_v2 }
  0x5f   :  { %v278_v41 = vmul.f32 %v433_v27, %v274_v38  ;;  %v281_v46 = vmul.f32 %v277_v39, %v255_v29 }
  0x61   :  { %v282_v47 = vmul.f32 %v278_v41, %v262_v37  ;;  %v316_v42 = vadd.f32 %v281_v46, %v279_v44 }
  0x62   :  { %v366_v54 = vld [vmem:[#allocation3] sm:$0x3] }
  0x63   :  { %v317_v48 = vadd.f32 %v282_v47, %v280_v45  ;;  %v368_v59 = vperm.slane %v366_v54, 0  ;;  %v369_v60 = vperm.slane %v366_v54, 1 }
  0x65   :  { %v320_v50 = vrot.slane %v317_v48, 7  ;;  %v372_v62 = vsel %vm321_vm6, %v368_v59, 0.0  ;;  %v373_v63 = vsel %vm321_vm6, %v369_v60, 0.0 }
  0x66   :  { %v374_v3 = vadd.f32 %v373_v63, %v372_v62 }
  0x67   :  { %v322_v51 = vsel %vm321_vm6, %v316_v42, %v320_v50 }
  0x68   :  { %v324_v52 = vadd.f32 %v322_v51, %v315_v49 }
  0x6a   :  { %329 = vst.msk [vmem:[#allocation2] sm:$0x3] %vm554_vm0, %v324_v52 }
  0x71   :  { %v346_v53 = vld [vmem:[#allocation2] sm:$0x3] }
  0x72   :  { %v348_v55 = vperm.slane %v346_v53, 0  ;;  %v349_v56 = vperm.slane %v346_v53, 1 }
  0x74   :  { %v352_v57 = vsel %vm321_vm6, %v348_v55, 0.0  ;;  %v353_v58 = vsel %vm321_vm6, %v349_v56, 0.0 }
  0x75   :  { %v354_v61 = vadd.f32 %v353_v58, %v352_v57 }
  0x77   :  { %355 = vadd.xlane.f32.xlu0 %v354_v61 }
  0x7f   :  { %375 = vadd.xlane.f32.xlu0 %v374_v3 }
  0xea   :  { %v356_v1 = vpop.xlane.xlu0 %355 }
  0xeb   :  { %v357_v4 = vrot.slane %v356_v1, 4 }
  0xed   :  { %v358_v5 = vadd.f32 %v357_v4, %v356_v1 }
  0xef   :  { %v359_v6 = vrot.slane %v358_v5, 2 }
  0xf1   :  { %v360_v0 = vadd.f32 %v359_v6, %v358_v5 }
  0xf2   :  { %v376_v7 = vpop.xlane.xlu0 %375 }
  0xf3   :  { %v377_v8 = vrot.slane %v376_v7, 4  ;;  %v361_v9 = vrot.slane %v360_v0, 1 }
  0xf5   :  { %v378_v10 = vadd.f32 %v377_v8, %v376_v7  ;;  %v362_v11 = vadd.f32 %v361_v9, %v360_v0 }
  0xf7   :  { %v379_v12 = vrot.slane %v378_v10, 2  ;;  %408 = vpush %v362_v11 }
  0xf9   :  { %v380_v13 = vadd.f32 %v379_v12, %v378_v10 }
  0xfb   :  { %v381_v14 = vrot.slane %v380_v13, 1 }
  0xfd   :  { %v382_v15 = vadd.f32 %v381_v14, %v380_v13 }
  0xff   :  { %410 = vpush %v382_v15 }
 0x128   :  { %s409_s30 = spop %408 }
 0x129   :  { %365 = sst [smem:[#allocation11]] %s409_s30 }
 0x130   :  { %s411_s7 = spop %410 }
 0x131   :  { %385 = sst [smem:[#allocation11 + $0x1]] %s411_s7 }
 0x132   :  { %394 = dma.smem_to_hbm %s523_s8, 16, %s392_s6, [#allocation8]  }
 0x133   :  { %512 = dma.done.wait [#allocation8], 16  }
 0x134   :  { %513 = vsyncadd [#allocation8], 4294967280 }
 0x135   :  { %399 = sfence }
 0x136   :  { %400 = vsyncpa [#allocation7], 1 }
 0x137   :  { %401 = vsyncpa [#allocation10], 1 }
 0x138   :  { %402 = vsyncpa [#allocation8], 1 }

</bundles_post_ra>
